<compile_context>
chip_gen: v7x
topology: tpu7x:2x2x1
jax: 0.10.0
libtpu: 0.0.40
codegen_flags: <defaults>
</compile_context>

<pallas_src>
import functools

import jax
import jax.numpy as jnp
from jax import lax
from jax.experimental import pallas as pl
from jax.experimental.pallas import tpu as pltpu

LANE = 128  # TPU lane width


def mu_net_kernel(x_ref, w1_ref, b1_ref, w2_ref, b2_ref, w3_ref, b3_ref, out_ref,
                  *, tb, cs):
    # Resident weights / biases (constant index maps -> loaded once per tile).
    w1 = w1_ref[...]                       # (128, 3)   f32
    b1 = b1_ref[...]                       # (128, 1)   f32
    w2 = w2_ref[...]                       # (64, 128)  bf16
    b2 = b2_ref[...]                       # (64, 1)    f32
    w3 = w3_ref[...]                       # (64, 1)    f32
    b3 = b3_ref[0, 0]                      # scalar     f32 (SMEM)

    n_chunks = tb // cs

    def chunk_body(c, carry):
        col = pl.multiple_of(c * cs, cs)
        xs = x_ref[:, pl.ds(col, cs)]                     # (3, cs)

        # fc1: K=3 contraction on the VPU (broadcast-MAC), keep off the MXU.
        h1 = (w1[:, 0:1] * xs[0:1, :]
              + w1[:, 1:2] * xs[1:2, :]
              + w1[:, 2:3] * xs[2:3, :]
              + b1)                                       # (128, cs) f32
        h1 = jnp.maximum(h1, 0.0)

        # fc2: MXU matmul, bf16 operands, f32 accumulation.
        h2 = jnp.dot(w2, h1.astype(jnp.bfloat16),
                     preferred_element_type=jnp.float32) + b2   # (64, cs) f32
        h2 = jnp.maximum(h2, 0.0)

        # fc_mu: 64->1 as broadcast-mul + sublane reduce (XLU), then tanh*2.
        mu = jnp.sum(w3 * h2, axis=0, keepdims=True) + b3       # (1, cs) f32
        out_ref[:, pl.ds(col, cs)] = jnp.tanh(mu) * 2.0
        return carry

    lax.fori_loop(0, n_chunks, chunk_body, 0, unroll=True)


def mu_net_forward(x, params, block_b=512):
    """x: (B, 3) f32; params in PyTorch layout (W: (out,in), b: (out,))."""
    w1, b1, w2, b2, w3, b3 = params
    B = x.shape[0]

    block_b = max(LANE, (block_b // LANE) * LANE)
    tb = min(block_b, pl.cdiv(B, LANE) * LANE)     # multiple of 128
    b_pad = pl.cdiv(B, tb) * tb
    grid = (b_pad // tb,)
    cs = LANE                                      # in-kernel sub-chunk (lanes)

    # Feature-major, lane-dense, zero-padded input (3, B_pad).
    x_fm = jnp.zeros((3, b_pad), jnp.float32).at[:, :B].set(x.T)

    # Weight / bias plumbing (done once, outside the kernel).
    w1k = w1.astype(jnp.float32)                   # (128, 3)
    b1k = b1.reshape(128, 1).astype(jnp.float32)
    w2k = w2.astype(jnp.bfloat16)                  # (64, 128) bf16 for the MXU
    b2k = b2.reshape(64, 1).astype(jnp.float32)
    w3k = w3.reshape(64, 1).astype(jnp.float32)
    b3k = b3.reshape(1, 1).astype(jnp.float32)     # SMEM scalar

    const = lambda shape: pl.BlockSpec(shape, lambda i: (0, 0))

    flops = 2 * b_pad * (3 * 128 + 128 * 64 + 64)
    bytes_accessed = (x_fm.size * 4 + b_pad * 4
                      + (w1k.size + b1k.size + b2k.size + w3k.size + b3k.size) * 4
                      + w2k.size * 2)

    out_fm = pl.pallas_call(
        functools.partial(mu_net_kernel, tb=tb, cs=cs),
        out_shape=jax.ShapeDtypeStruct((1, b_pad), jnp.float32),
        grid=grid,
        in_specs=[
            pl.BlockSpec((3, tb), lambda i: (0, i)),       # x tile (streamed)
            const((128, 3)),                               # w1  (resident)
            const((128, 1)),                               # b1
            const((64, 128)),                              # w2 (bf16)
            const((64, 1)),                                # b2
            const((64, 1)),                                # w3
            pl.BlockSpec(memory_space=pltpu.MemorySpace.SMEM),  # b3 scalar
        ],
        out_specs=pl.BlockSpec((1, tb), lambda i: (0, i)),
        compiler_params=pltpu.CompilerParams(
            dimension_semantics=("parallel",)),
        cost_estimate=pl.CostEstimate(
            flops=flops, transcendentals=b_pad, bytes_accessed=bytes_accessed),
    )(x_fm, w1k, b1k, w2k, b2k, w3k, b3k)

    return out_fm[:, :B].T                                  # (B, 1)


def init_params(key):
    """PyTorch nn.Linear default init: U[-1/sqrt(fan_in), +1/sqrt(fan_in)]."""
    def linear(key, fan_in, fan_out):
        kw, kb = jax.random.split(key)
        bound = 1.0 / jnp.sqrt(float(fan_in))
        w = jax.random.uniform(kw, (fan_out, fan_in), jnp.float32, -bound, bound)
        b = jax.random.uniform(kb, (fan_out,), jnp.float32, -bound, bound)
        return w, b

    k1, k2, k3 = jax.random.split(key, 3)
    w1, b1 = linear(k1, 3, 128)
    w2, b2 = linear(k2, 128, 64)
    w3, b3 = linear(k3, 64, 1)
    return (w1, b1, w2, b2, w3, b3)


def mu_net_ref(x, params):
    """Pure-JAX f32 reference (PyTorch semantics)."""
    w1, b1, w2, b2, w3, b3 = params
    h1 = jnp.maximum(x @ w1.T + b1, 0.0)
    h2 = jnp.maximum(h1 @ w2.T + b2, 0.0)
    return jnp.tanh(h2 @ w3.T + b3) * 2.0


if __name__ == "__main__":
    key = jax.random.PRNGKey(0)
    k_param, k_x = jax.random.split(key)

    params = init_params(k_param)
    # pendulum-like state input: (batch, 3)
    x = jax.random.normal(k_x, (8, 3), jnp.float32)

    out = mu_net_forward(x, params)
    out = jax.block_until_ready(out)

    ref = mu_net_ref(x, params)
    assert out.shape == (8, 1), out.shape
    # fc2 runs with bf16 MXU operands (f32 accumulation) -> loosened tolerance.
    assert jnp.allclose(out, ref, atol=2e-2, rtol=2e-2), (out, ref)
    assert jnp.all(jnp.abs(out) <= 2.0)  # tanh * 2 bound

    print("KERNEL_OK")
</pallas_src>

<mosaic_0001>
module attributes {stable_mosaic.version = 11 : i64} {
  func.func @mu_net_kernel(%arg0: i32, %arg1: memref<3x128xf32, #tpu.memory_space<vmem>>, %arg2: memref<128x3xf32, #tpu.memory_space<vmem>>, %arg3: memref<128x1xf32, #tpu.memory_space<vmem>>, %arg4: memref<64x128xbf16, #tpu.memory_space<vmem>>, %arg5: memref<64x1xf32, #tpu.memory_space<vmem>>, %arg6: memref<64x1xf32, #tpu.memory_space<vmem>>, %arg7: memref<1x1xf32, #tpu.memory_space<smem>>, %arg8: memref<1x128xf32, #tpu.memory_space<vmem>>) attributes {dimension_semantics = [#tpu.dimension_semantics<parallel>], iteration_bounds = array<i64: 1>, scalar_prefetch = 0 : i64, scratch_operands = 0 : i64, tpu.core_type = #tpu.core_type<tc>, window_params = [{transform_indices = @transform_0, window_bounds = array<i64: 3, 128>}, {pipeline_mode = #tpu.pipeline_mode<synchronous>, transform_indices = @transform_1, window_bounds = array<i64: 128, 3>}, {pipeline_mode = #tpu.pipeline_mode<synchronous>, transform_indices = @transform_2, window_bounds = array<i64: 128, 1>}, {pipeline_mode = #tpu.pipeline_mode<synchronous>, transform_indices = @transform_3, window_bounds = array<i64: 64, 128>}, {pipeline_mode = #tpu.pipeline_mode<synchronous>, transform_indices = @transform_4, window_bounds = array<i64: 64, 1>}, {pipeline_mode = #tpu.pipeline_mode<synchronous>, transform_indices = @transform_5, window_bounds = array<i64: 64, 1>}, {transform_indices = @transform_6, window_bounds = array<i64: 1, 1>}, {transform_indices = @transform_7, window_bounds = array<i64: 1, 128>}]} {
    %c0 = arith.constant 0 : index
    %c0_0 = arith.constant 0 : index
    %0 = vector.load %arg2[%c0, %c0_0] : memref<128x3xf32, #tpu.memory_space<vmem>>, vector<128x3xf32>
    %c0_1 = arith.constant 0 : index
    %c0_2 = arith.constant 0 : index
    %1 = vector.load %arg3[%c0_1, %c0_2] : memref<128x1xf32, #tpu.memory_space<vmem>>, vector<128x1xf32>
    %c0_3 = arith.constant 0 : index
    %c0_4 = arith.constant 0 : index
    %2 = vector.load %arg4[%c0_3, %c0_4] : memref<64x128xbf16, #tpu.memory_space<vmem>>, vector<64x128xbf16>
    %c0_5 = arith.constant 0 : index
    %c0_6 = arith.constant 0 : index
    %3 = vector.load %arg5[%c0_5, %c0_6] : memref<64x1xf32, #tpu.memory_space<vmem>>, vector<64x1xf32>
    %c0_7 = arith.constant 0 : index
    %c0_8 = arith.constant 0 : index
    %4 = vector.load %arg6[%c0_7, %c0_8] : memref<64x1xf32, #tpu.memory_space<vmem>>, vector<64x1xf32>
    %c0_9 = arith.constant 0 : index
    %c0_10 = arith.constant 0 : index
    %5 = memref.load %arg7[%c0_9, %c0_10] : memref<1x1xf32, #tpu.memory_space<smem>>
    %c0_i32 = arith.constant 0 : i32
    %c128_i32 = arith.constant 128 : i32
    %6 = arith.muli %c0_i32, %c128_i32 : i32
    %7 = tpu.assume_multiple %6, 128 : i32
    %c0_11 = arith.constant 0 : index
    %8 = arith.index_cast %7 : i32 to index
    %9 = vector.load %arg1[%c0_11, %8] : memref<3x128xf32, #tpu.memory_space<vmem>>, vector<3x128xf32>
    %10 = vector.extract_strided_slice %0 {offsets = [0, 0], sizes = [128, 1], strides = [1, 1]} : vector<128x3xf32> to vector<128x1xf32>
    %11 = vector.extract_strided_slice %9 {offsets = [0, 0], sizes = [1, 128], strides = [1, 1]} : vector<3x128xf32> to vector<1x128xf32>
    %12 = vector.broadcast %10 : vector<128x1xf32> to vector<128x128xf32>
    %13 = vector.broadcast %11 : vector<1x128xf32> to vector<128x128xf32>
    %14 = arith.mulf %12, %13 : vector<128x128xf32>
    %15 = vector.extract_strided_slice %0 {offsets = [0, 1], sizes = [128, 1], strides = [1, 1]} : vector<128x3xf32> to vector<128x1xf32>
    %16 = vector.extract_strided_slice %9 {offsets = [1, 0], sizes = [1, 128], strides = [1, 1]} : vector<3x128xf32> to vector<1x128xf32>
    %17 = vector.broadcast %15 : vector<128x1xf32> to vector<128x128xf32>
    %18 = vector.broadcast %16 : vector<1x128xf32> to vector<128x128xf32>
    %19 = arith.mulf %17, %18 : vector<128x128xf32>
    %20 = arith.addf %14, %19 : vector<128x128xf32>
    %21 = vector.extract_strided_slice %0 {offsets = [0, 2], sizes = [128, 1], strides = [1, 1]} : vector<128x3xf32> to vector<128x1xf32>
    %22 = vector.extract_strided_slice %9 {offsets = [2, 0], sizes = [1, 128], strides = [1, 1]} : vector<3x128xf32> to vector<1x128xf32>
    %23 = vector.broadcast %21 : vector<128x1xf32> to vector<128x128xf32>
    %24 = vector.broadcast %22 : vector<1x128xf32> to vector<128x128xf32>
    %25 = arith.mulf %23, %24 : vector<128x128xf32>
    %26 = arith.addf %20, %25 : vector<128x128xf32>
    %27 = vector.broadcast %1 : vector<128x1xf32> to vector<128x128xf32>
    %28 = arith.addf %26, %27 : vector<128x128xf32>
    %cst = arith.constant 0.000000e+00 : f32
    %29 = vector.broadcast %cst : f32 to vector<128x128xf32>
    %30 = arith.maximumf %28, %29 : vector<128x128xf32>
    %31 = arith.truncf %30 : vector<128x128xf32> to vector<128x128xbf16>
    %cst_12 = arith.constant dense<0.000000e+00> : vector<64x128xf32>
    %32 = tpu.matmul %2, %31, %cst_12 {dimension_numbers = #tpu.dot_dimension_numbers<[1], [0], [0], [1], [0, 0, 1, 1], [], []>} : vector<64x128xbf16>, vector<128x128xbf16>, vector<64x128xf32> -> vector<64x128xf32>
    %33 = vector.broadcast %3 : vector<64x1xf32> to vector<64x128xf32>
    %34 = arith.addf %32, %33 : vector<64x128xf32>
    %cst_13 = arith.constant 0.000000e+00 : f32
    %35 = vector.broadcast %cst_13 : f32 to vector<64x128xf32>
    %36 = arith.maximumf %34, %35 : vector<64x128xf32>
    %37 = vector.broadcast %4 : vector<64x1xf32> to vector<64x128xf32>
    %38 = arith.mulf %37, %36 : vector<64x128xf32>
    %cst_14 = arith.constant dense<0.000000e+00> : vector<128xf32>
    %39 = vector.multi_reduction <add>, %38, %cst_14 [0] : vector<64x128xf32> to vector<128xf32>
    %40 = vector.shape_cast %39 : vector<128xf32> to vector<1x128xf32>
    %41 = vector.broadcast %5 : f32 to vector<1x128xf32>
    %42 = arith.addf %40, %41 : vector<1x128xf32>
    %43 = math.tanh %42 : vector<1x128xf32>
    %cst_15 = arith.constant 2.000000e+00 : f32
    %44 = vector.broadcast %cst_15 : f32 to vector<1x128xf32>
    %45 = arith.mulf %43, %44 : vector<1x128xf32>
    %c0_16 = arith.constant 0 : index
    %46 = arith.index_cast %7 : i32 to index
    %47 = vector.load %arg8[%c0_16, %46] : memref<1x128xf32, #tpu.memory_space<vmem>>, vector<1x128xf32>
    tpu.vector_store %arg8[%c0_16, %46], %45 {strides = array<i32>} : memref<1x128xf32, #tpu.memory_space<vmem>>, vector<1x128xf32>,
    %c1_i32 = arith.constant 1 : i32
    return
  }
  func.func @transform_0(%arg0: i32) -> (i32, i32) {
    %c0_i32 = arith.constant 0 : i32
    %c0_i32_0 = arith.constant 0 : i32
    return %c0_i32, %arg0 : i32, i32
  }
  func.func @transform_1(%arg0: i32) -> (i32, i32) {
    %c0_i32 = arith.constant 0 : i32
    %c0_i32_0 = arith.constant 0 : i32
    %c0_i32_1 = arith.constant 0 : i32
    return %c0_i32, %c0_i32_0 : i32, i32
  }
  func.func @transform_2(%arg0: i32) -> (i32, i32) {
    %c0_i32 = arith.constant 0 : i32
    %c0_i32_0 = arith.constant 0 : i32
    %c0_i32_1 = arith.constant 0 : i32
    return %c0_i32, %c0_i32_0 : i32, i32
  }
  func.func @transform_3(%arg0: i32) -> (i32, i32) {
    %c0_i32 = arith.constant 0 : i32
    %c0_i32_0 = arith.constant 0 : i32
    %c0_i32_1 = arith.constant 0 : i32
    return %c0_i32, %c0_i32_0 : i32, i32
  }
  func.func @transform_4(%arg0: i32) -> (i32, i32) {
    %c0_i32 = arith.constant 0 : i32
    %c0_i32_0 = arith.constant 0 : i32
    %c0_i32_1 = arith.constant 0 : i32
    return %c0_i32, %c0_i32_0 : i32, i32
  }
  func.func @transform_5(%arg0: i32) -> (i32, i32) {
    %c0_i32 = arith.constant 0 : i32
    %c0_i32_0 = arith.constant 0 : i32
    %c0_i32_1 = arith.constant 0 : i32
    return %c0_i32, %c0_i32_0 : i32, i32
  }
  func.func @transform_6(%arg0: i32) -> (i32, i32) {
    %c0_i32 = arith.constant 0 : i32
    %c0_i32_0 = arith.constant 0 : i32
    %c0_i32_1 = arith.constant 0 : i32
    return %c0_i32, %c0_i32_0 : i32, i32
  }
  func.func @transform_7(%arg0: i32) -> (i32, i32) {
    %c0_i32 = arith.constant 0 : i32
    %c0_i32_0 = arith.constant 0 : i32
    return %c0_i32, %arg0 : i32, i32
  }
}

</mosaic_0001>

<bundles_post_ra>
// kernel: tpu_custom_call.1
= control target key start
LH: loop header
LB: loop body
LE: loop exit
PB: predicated region body
PF: predicated region fallthrough
CT: control target
= control target key end

     0   :  { %v841_v1 = vmov 2   ;;  %v842_v2 = vmov 1   ;;  %v843_v7 = vmov 0   ;;  %s1190_s0 = inlined_call_operand.vmem [shape: f32[3,128], index: 0, kind: input, shape index: {}]   ;;  %s1191_s1 = inlined_call_operand.vmem [shape: f32[128,3], index: 1, kind: input, shape index: {}]   ;;  %s1192_s2 = inlined_call_operand.vmem [shape: f32[128,1], index: 2, kind: input, shape index: {}]   ;;  %s1193_s3 = inlined_call_operand.vmem [shape: bf16[64,128], index: 3, kind: input, shape index: {}]   ;;  %s1194_s4 = inlined_call_operand.vmem [shape: f32[64,1], index: 4, kind: input, shape index: {}]   ;;  %s1195_s5 = inlined_call_operand.vmem [shape: f32[64,1], index: 5, kind: input, shape index: {}]   ;;  %s1196_s6 = inlined_call_operand.<no memory space> [shape: f32[1,1], index: 6, kind: input, shape index: {}]   ;;  %s1197_s7 = inlined_call_operand.hbm [shape: f32[1,128], index: 7, kind: output, shape index: {}]  }
   0x1   :  { %v29_v0 = vld [vmem:[%s1191_s1] sm:$0xff]  ;;  %785 = vset.pattern.permute.xlu0 %v841_v1  ;;  %784 = vset.pattern.permute.xlu1 %v842_v2  ;;  %v31_v3 = vld [vmem:[%s1191_s1 + $0x10] sm:$0xff]  ;;  %v30_v4 = vld [vmem:[%s1191_s1 + $0x8] sm:$0xff] }
   0x2   :  { %288 = vperm.xlu0 %785, %v29_v0   ;;  %188 = vperm.xlu1 %784, %v29_v0   ;;  %v34_v5 = vld [vmem:[%s1191_s1 + $0x28] sm:$0xff]  ;;  %v33_v6 = vld [vmem:[%s1191_s1 + $0x20] sm:$0xff] }
   0x6   :  { %296 = vperm.xlu0 %785, %v31_v3   ;;  %192 = vperm.xlu1 %784, %v30_v4  }
   0xa   :  { %308 = vperm.xlu0 %785, %v34_v5   ;;  %786 = vset.pattern.permute.xlu1 %v841_v1 }
   0xb   :  { %292 = vperm.xlu1 %786, %v30_v4  }
   0xe   :  { %793 = vset.pattern.permute.xlu0 %v842_v2 }
   0xf   :  { %204 = vperm.xlu0 %793, %v33_v6   ;;  %787 = vset.pattern.permute.xlu1 %v843_v7 }
  0x10   :  { %13 = vsyncpa [#allocation4], 0  ;;  %99 = vperm.xlu1 %787, %v31_v3   ;;  %v36_v8 = vld [vmem:[%s1191_s1 + $0x38] sm:$0xff]  ;;  %v912_v9 = vld [vmem:[%s1191_s1 + $0x48] sm:$0xff]  ;;  %v167_v51 = vlaneseq }
  0x11   :  { %v32_v10 = vld [vmem:[%s1191_s1 + $0x18] sm:$0xff]  ;;  %v927_v12 = vld [vmem:[%s1191_s1 + $0x68] sm:$0xff]  ;;  %v45_v14 = vld [vmem:[%s1192_s2] sm:$0xff] }
  0x12   :  { %v921_v11 = vld [vmem:[%s1191_s1 + $0x58] sm:$0xff]  ;;  %v46_v15 = vld [vmem:[%s1192_s2 + $0x8] sm:$0xff]  ;;  %v35_v16 = vld [vmem:[%s1191_s1 + $0x30] sm:$0xff]  ;;  %v168_v55 = vshrl.u32 %v167_v51, 7 }
  0x13   :  { %216 = vperm.xlu0 %793, %v36_v8   ;;  %v934_v13 = vld [vmem:[%s1191_s1 + $0x78] sm:$0xff]  ;;  %v47_v17 = vld [vmem:[%s1192_s2 + $0x10] sm:$0xff]  ;;  %v49_v18 = vld [vmem:[%s1192_s2 + $0x20] sm:$0xff] }
  0x14   :  { %788 = vset.pattern.permute.xlu1 %v842_v2  ;;  %v48_v19 = vld [vmem:[%s1192_s2 + $0x18] sm:$0xff]  ;;  %v51_v20 = vld [vmem:[%s1192_s2 + $0x30] sm:$0xff]  ;;  %v53_v21 = vld [vmem:[%s1192_s2 + $0x40] sm:$0xff]  ;;  %v253_v58 = vsub.s32 1, %v168_v55  ;;  %v169_v60 = vsub.s32 0, %v168_v55 }
  0x15   :  { %196 = vperm.xlu1 %788, %v31_v3   ;;  %v55_v22 = vld [vmem:[%s1192_s2 + $0x50] sm:$0xff]  ;;  %v50_v23 = vld [vmem:[%s1192_s2 + $0x28] sm:$0xff]  ;;  %v37_v24 = vld [vmem:[%s1191_s1 + $0x40] sm:$0xff] }
  0x16   :  { %v57_v25 = vld [vmem:[%s1192_s2 + $0x60] sm:$0xff]  ;;  %v60_v26 = vld [vmem:[%s1192_s2 + $0x78] sm:$0xff]  ;;  %v70_v27 = vld [vmem:[%s1194_s4 + $0x8] sm:$0xff] }
  0x17   :  { %224 = vperm.xlu0 %793, %v912_v9   ;;  %v72_v28 = vld [vmem:[%s1194_s4 + $0x18] sm:$0xff]  ;;  %v78_v29 = vld [vmem:[%s1195_s5 + $0x8] sm:$0xff]  ;;  %v79_v31 = vld [vmem:[%s1195_s5 + $0x10] sm:$0xff] }
  0x18   :  { %v52_v30 = vld [vmem:[%s1192_s2 + $0x38] sm:$0xff]  ;;  %v39_v32 = vld [vmem:[%s1191_s1 + $0x50] sm:$0xff]  ;;  %v81_v34 = vld [vmem:[%s1195_s5 + $0x20] sm:$0xff] }
  0x19   :  { %200 = vperm.xlu1 %788, %v32_v10   ;;  %v80_v33 = vld [vmem:[%s1195_s5 + $0x18] sm:$0xff]  ;;  %v82_v35 = vld [vmem:[%s1195_s5 + $0x28] sm:$0xff]  ;;  %v41_v40 = vld [vmem:[%s1191_s1 + $0x60] sm:$0xff] }
  0x1a   :  { %v84_v36 = vld [vmem:[%s1195_s5 + $0x38] sm:$0xff]  ;;  %v54_v37 = vld [vmem:[%s1192_s2 + $0x48] sm:$0xff]  ;;  %v43_v54 = vld [vmem:[%s1191_s1 + $0x70] sm:$0xff]  ;;  %s844_s1 = smov [#allocation3]  }
  0x1b   :  { %232 = vperm.xlu0 %793, %v921_v11   ;;  %v56_v50 = vld [vmem:[%s1192_s2 + $0x58] sm:$0xff]  ;;  %v86_v59 = vld [vmem:[%s1190_s0] sm:$0x7]  ;;  %s716_s10 = sshll.u32 %s844_s1, 4  ;;  %s717_s10 = int_to_ptr.vmem [resolvable:$true] %s716_s10 }
  0x1c   :  { %v1062_v63 = vrot.slane %v86_v59, %v253_v58  ;;  %v1064_v3 = vrot.slane %v86_v59, %v169_v60  ;;  %s817_s11 = scalar_lea.vmem %s717_s10, 16  ;;  %s821_s12 = scalar_lea.vmem %s717_s10, 32 }
  0x1d   :  { %789 = vset.pattern.permute.xlu1 %v841_v1  ;;  %p818_p0 = scmp.ne.s32.totalorder %s717_s10, %s817_s11  ;;  %p822_p1 = scmp.lt.s32.totalorder %s717_s10, %s717_s10 }
  0x1e   :  { %300 = vperm.xlu1 %789, %v32_v10   ;;  %p823_p2 = scmp.lt.s32.totalorder %s821_s12, %s817_s11 }
  0x1f   :  { %240 = vperm.xlu0 %793, %v927_v12  }
  0x20   :  { %p824_p3 = por %p823_p2, %p822_p1 }
  0x22   :  { %790 = vset.pattern.permute.xlu1 %v843_v7  ;;  %p825_p4 = pnand %p824_p3, %p818_p0 }
  0x23   :  { %248 = vperm.xlu0 %793, %v934_v13   ;;  %389 = vperm.xlu1 %790, %v45_v14  }
  0x27   :  { %808 = vset.pattern.permute.xlu0 %v843_v7  ;;  %109 = vperm.xlu1 %790, %v33_v6  }
  0x28   :  { %89 = vperm.xlu0 %808, %v29_v0   ;;  %v353_v0 = vsub.s32 2, %v168_v55 }
  0x2b   :  { %114 = vperm.xlu1 %790, %v34_v5  }
  0x2c   :  { %94 = vperm.xlu0 %808, %v30_v4  }
  0x2f   :  { %791 = vset.pattern.permute.xlu1 %v842_v2 }
  0x30   :  { %104 = vperm.xlu0 %808, %v32_v10   ;;  %208 = vperm.xlu1 %791, %v34_v5  }
  0x34   :  { %394 = vperm.xlu0 %808, %v46_v15   ;;  %792 = vset.pattern.permute.xlu1 %v841_v1 }
  0x35   :  { %304 = vperm.xlu1 %792, %v33_v6  }
  0x38   :  { %119 = vperm.xlu0 %808, %v35_v16  }
  0x39   :  { %794 = vset.pattern.permute.xlu1 %v843_v7 }
  0x3a   :  { %399 = vperm.xlu1 %794, %v47_v17   ;;  %v58_v17 = vld [vmem:[%s1192_s2 + $0x68] sm:$0xff] }
  0x3c   :  { %409 = vperm.xlu0 %808, %v49_v18  }
  0x3e   :  { %404 = vperm.xlu1 %794, %v48_v19  }
  0x40   :  { %134 = vperm.xlu0 %808, %v912_v9  }
  0x42   :  { %124 = vperm.xlu1 %794, %v36_v8  }
  0x44   :  { %419 = vperm.xlu0 %808, %v51_v20  }
  0x46   :  { %795 = vset.pattern.permute.xlu1 %v842_v2 }
  0x47   :  { %212 = vperm.xlu1 %795, %v35_v16  }
  0x48   :  { %144 = vperm.xlu0 %808, %v921_v11  }
  0x4b   :  { %796 = vset.pattern.permute.xlu1 %v841_v1 }
  0x4c   :  { %429 = vperm.xlu0 %808, %v53_v21   ;;  %312 = vperm.xlu1 %796, %v35_v16  }
  0x50   :  { %154 = vperm.xlu0 %808, %v927_v12   ;;  %316 = vperm.xlu1 %796, %v36_v8   ;;  %v1070_v8 = vrot.slane %v86_v59, %v353_v0  ;;  %v74_v59 = vld [vmem:[%s1194_s4 + $0x28] sm:$0xff] }
  0x54   :  { %439 = vperm.xlu0 %808, %v55_v22   ;;  %797 = vset.pattern.permute.xlu1 %v843_v7 }
  0x55   :  { %414 = vperm.xlu1 %797, %v50_v23  }
  0x58   :  { %164 = vperm.xlu0 %808, %v934_v13  }
  0x59   :  { %129 = vperm.xlu1 %797, %v37_v24  }
  0x5c   :  { %449 = vperm.xlu0 %808, %v57_v25  }
  0x5d   :  { %798 = vset.pattern.permute.xlu1 %v842_v2 }
  0x5e   :  { %220 = vperm.xlu1 %798, %v37_v24  }
  0x60   :  { %464 = vperm.xlu0 %808, %v60_v26  }
  0x62   :  { %799 = vset.pattern.permute.xlu1 %v841_v1 }
  0x63   :  { %320 = vperm.xlu1 %799, %v37_v24  }
  0x64   :  { %514 = vperm.xlu0 %808, %v70_v27  }
  0x67   :  { %324 = vperm.xlu1 %799, %v912_v9  }
  0x68   :  { %524 = vperm.xlu0 %808, %v72_v28  }
  0x6b   :  { %800 = vset.pattern.permute.xlu1 %v843_v7 }
  0x6c   :  { %651 = vperm.xlu0 %808, %v78_v29   ;;  %424 = vperm.xlu1 %800, %v52_v30  }
  0x70   :  { %656 = vperm.xlu0 %808, %v79_v31   ;;  %139 = vperm.xlu1 %800, %v39_v32  }
  0x74   :  { %661 = vperm.xlu0 %808, %v80_v33   ;;  %801 = vset.pattern.permute.xlu1 %v842_v2  ;;  %v69_v33 = vld [vmem:[%s1194_s4] sm:$0xff] }
  0x75   :  { %228 = vperm.xlu1 %801, %v39_v32  }
  0x78   :  { %666 = vperm.xlu0 %808, %v81_v34  }
  0x79   :  { %802 = vset.pattern.permute.xlu1 %v841_v1 }
  0x7a   :  { %328 = vperm.xlu1 %802, %v39_v32  }
  0x7c   :  { %671 = vperm.xlu0 %808, %v82_v35  }
  0x7e   :  { %332 = vperm.xlu1 %802, %v921_v11  }
  0x80   :  { %681 = vperm.xlu0 %808, %v84_v36  }
  0x81   :  { %v189_v38 = vpop.permute.xlu1 %188  ;;  %v289_v39 = vpop.permute.xlu0 %288 }
  0x82   :  { %803 = vset.pattern.permute.xlu1 %v843_v7  ;;  %v255_v6 = vmul.f32 %v1062_v63, %v189_v38  ;;  %v355_v9 = vmul.f32 %v1070_v8, %v289_v39  ;;  %v71_v39 = vld [vmem:[%s1194_s4 + $0x10] sm:$0xff] }
  0x83   :  { %434 = vperm.xlu1 %803, %v54_v37  }
  0x85   :  { %v193_v41 = vpop.permute.xlu1 %192  ;;  %v1032_v42 = vpop.permute.xlu0 %296 }
  0x86   :  { %v256_v14 = vmul.f32 %v1062_v63, %v193_v41  ;;  %v357_v29 = vmul.f32 %v1070_v8, %v1032_v42  ;;  %v811_v42 = vld [vmem:[%s1193_s3] sm:$0xff]  }
  0x87   :  { %149 = vperm.xlu1 %803, %v41_v40   ;;  %756 = vmatprep.mubr.bf16.mxu0 %v811_v42 }
  0x89   :  { %v1034_v43 = vpop.permute.xlu0 %308 }
  0x8a   :  { %v293_v44 = vpop.permute.xlu1 %292 }
  0x8b   :  { %804 = vset.pattern.permute.xlu1 %v842_v2  ;;  %v356_v20 = vmul.f32 %v1070_v8, %v293_v44  ;;  %v812_v44 = vld [vmem:[%s1193_s3 + $0x10] sm:$0xff]  }
  0x8c   :  { %236 = vperm.xlu1 %804, %v41_v40   ;;  %760 = vmatprep.mubr.bf16.mxu1 %v812_v44 }
  0x8e   :  { %v1037_v45 = vpop.permute.xlu0 %204 }
  0x8f   :  { %v100_v46 = vpop.permute.xlu1 %99  ;;  %v259_v0 = vmul.f32 %v1062_v63, %v1037_v45 }
  0x90   :  { %805 = vset.pattern.permute.xlu1 %v841_v1  ;;  %v173_v25 = vmul.f32 %v1064_v3, %v100_v46 }
  0x91   :  { %336 = vperm.xlu1 %805, %v41_v40  }
  0x92   :  { %v1040_v47 = vpop.permute.xlu0 %216 }
  0x94   :  { %v197_v48 = vpop.permute.xlu1 %196 }
  0x95   :  { %340 = vperm.xlu1 %805, %v927_v12   ;;  %v257_v21 = vmul.f32 %v1062_v63, %v197_v48 }
  0x96   :  { %v1043_v49 = vpop.permute.xlu0 %224 }
  0x98   :  { %v201_v52 = vpop.permute.xlu1 %200 }
  0x99   :  { %806 = vset.pattern.permute.xlu1 %v843_v7  ;;  %v258_v30 = vmul.f32 %v1062_v63, %v201_v52 }
  0x9a   :  { %444 = vperm.xlu1 %806, %v56_v50   ;;  %v1049_v53 = vpop.permute.xlu0 %232  ;;  %v77_v50 = vld [vmem:[%s1195_s5] sm:$0xff] }
  0x9d   :  { %v301_v56 = vpop.permute.xlu1 %300 }
  0x9e   :  { %159 = vperm.xlu1 %806, %v43_v54   ;;  %v1054_v57 = vpop.permute.xlu0 %240  ;;  %v358_v37 = vmul.f32 %v1070_v8, %v301_v56  ;;  %v73_v56 = vld [vmem:[%s1194_s4 + $0x20] sm:$0xff] }
  0xa2   :  { %807 = vset.pattern.permute.xlu1 %v842_v2  ;;  %v390_v61 = vpop.permute.xlu1 %389  ;;  %v1060_v62 = vpop.permute.xlu0 %248 }
  0xa3   :  { %244 = vperm.xlu1 %807, %v43_v54  }
  0xa6   :  { %v1066_v4 = vpop.permute.xlu1 %109 }
  0xa7   :  { %v90_v5 = vpop.permute.xlu0 %89  ;;  %809 = vset.pattern.permute.xlu1 %v841_v1 }
  0xa8   :  { %v171_v2 = vmul.f32 %v1064_v3, %v90_v5  ;;  %344 = vperm.xlu1 %809, %v43_v54   ;;  %v175_v5 = vmul.f32 %v1064_v3, %v1066_v4 }
  0xaa   :  { %v271_v10 = vadd.f32 %v255_v6, %v171_v2  ;;  %v1074_v11 = vpop.permute.xlu1 %114  ;;  %v275_v45 = vadd.f32 %v259_v0, %v175_v5 }
  0xab   :  { %v95_v12 = vpop.permute.xlu0 %94 }
  0xac   :  { %v172_v15 = vmul.f32 %v1064_v3, %v95_v12  ;;  %348 = vperm.xlu1 %809, %v934_v13   ;;  %v371_v1 = vadd.f32 %v355_v9, %v271_v10  ;;  %v59_v13 = vld [vmem:[%s1192_s2 + $0x70] sm:$0xff]  ;;  %v176_v9 = vmul.f32 %v1064_v3, %v1074_v11  ;;  %v76_v12 = vld [vmem:[%s1194_s4 + $0x38] sm:$0xff] }
  0xad   :  { %v83_v11 = vld [vmem:[%s1195_s5 + $0x30] sm:$0xff] }
  0xae   :  { %v272_v16 = vadd.f32 %v256_v14, %v172_v15  ;;  %v467_v23 = vadd.f32 %v390_v61, %v371_v1  ;;  %v75_v61 = vld [vmem:[%s1194_s4 + $0x30] sm:$0xff]  ;;  %v360_v14 = vmul.f32 %v1070_v8, %v1034_v43 }
  0xaf   :  { %v105_v18 = vpop.permute.xlu0 %104  ;;  %v209_v19 = vpop.permute.xlu1 %208 }
  0xb0   :  { %810 = vset.pattern.permute.xlu1 %v843_v7  ;;  %v372_v22 = vadd.f32 %v356_v20, %v272_v16  ;;  %v174_v26 = vmul.f32 %v1064_v3, %v105_v18  ;;  %v273_v7 = vadd.f32 %v257_v21, %v173_v25  ;;  %v483_v31 = vmax.f32 %v467_v23, 0.0 }
  0xb1   :  { %454 = vperm.xlu1 %810, %v58_v17   ;;  %v260_v6 = vmul.f32 %v1062_v63, %v209_v19 }
  0xb2   :  { %v274_v34 = vadd.f32 %v258_v30, %v174_v26  ;;  %v373_v38 = vadd.f32 %v357_v29, %v273_v7  ;;  %v262_v29 = vmul.f32 %v1062_v63, %v1040_v47 }
  0xb3   :  { %v395_v24 = vpop.permute.xlu0 %394  ;;  %v276_v15 = vadd.f32 %v260_v6, %v176_v9 }
  0xb4   :  { %v468_v27 = vadd.f32 %v395_v24, %v372_v22  ;;  %v305_v28 = vpop.permute.xlu1 %304  ;;  %v374_v41 = vadd.f32 %v358_v37, %v274_v34 }
  0xb5   :  { %459 = vperm.xlu1 %810, %v59_v13   ;;  %v359_v10 = vmul.f32 %v1070_v8, %v305_v28  ;;  %v376_v18 = vadd.f32 %v360_v14, %v276_v15 }
  0xb6   :  { %v484_v32 = vmax.f32 %v468_v27, 0.0 }
  0xb7   :  { %v120_v60 = vpop.permute.xlu0 %119  ;;  %v375_v16 = vadd.f32 %v359_v10, %v275_v45 }
  0xb8   :  { %v499_v35 = vpack.c.bf16 %v484_v32, %v483_v31  ;;  %v177_v24 = vmul.f32 %v1064_v3, %v120_v60 }
  0xb9   :  { %509 = vperm.xlu1 %810, %v69_v33   ;;  %v400_v36 = vpop.permute.xlu1 %399 }
  0xba   :  { %740 = vmatprep.subr.bf16.mxu0 %v499_v35  ;;  %764 = vmatprep.subr.bf16.mxu1 %v499_v35  ;;  %v469_v40 = vadd.f32 %v400_v36, %v373_v38 }
  0xbb   :  { %741 = vmatpush3.bf16.msra.mxu0 %v499_v35  ;;  %772 = vmatpush3.bf16.msra.mxu1 %v499_v35  ;;  %v410_v4 = vpop.permute.xlu0 %409 }
  0xbc   :  { %v485_v51 = vmax.f32 %v469_v40, 0.0  ;;  %v471_v17 = vadd.f32 %v410_v4, %v375_v16 }
  0xbd   :  { %519 = vperm.xlu1 %810, %v71_v39   ;;  %v405_v46 = vpop.permute.xlu1 %404 }
  0xbe   :  { %v470_v48 = vadd.f32 %v405_v46, %v374_v41  ;;  %v487_v21 = vmax.f32 %v471_v17, 0.0  ;;  %v266_v17 = vmul.f32 %v1062_v63, %v1049_v53 }
  0xbf   :  { %v135_v28 = vpop.permute.xlu0 %134 }
  0xc0   :  { %v486_v52 = vmax.f32 %v470_v48, 0.0  ;;  %v264_v48 = vmul.f32 %v1062_v63, %v1043_v49 }
  0xc1   :  { %646 = vperm.xlu1 %810, %v77_v50   ;;  %v125_v54 = vpop.permute.xlu1 %124  ;;  %v180_v50 = vmul.f32 %v1064_v3, %v135_v28 }
  0xc2   :  { %v500_v55 = vpack.c.bf16 %v486_v52, %v485_v51  ;;  %v178_v7 = vmul.f32 %v1064_v3, %v125_v54 }
  0xc3   :  { %v420_v35 = vpop.permute.xlu0 %419 }
  0xc4   :  { %742 = vmatprep.subr.bf16.mxu0 %v500_v55  ;;  %765 = vmatprep.subr.bf16.mxu1 %v500_v55  ;;  %v278_v34 = vadd.f32 %v262_v29, %v178_v7 }
  0xc5   :  { %529 = vperm.xlu1 %810, %v73_v56   ;;  %743 = vmatpush3.bf16.msra.mxu0 %v500_v55 }
  0xc6   :  { %773 = vmatpush3.bf16.msra.mxu1 %v500_v55  ;;  %v213_v58 = vpop.permute.xlu1 %212 }
  0xc7   :  { %v261_v25 = vmul.f32 %v1062_v63, %v213_v58  ;;  %v145_v55 = vpop.permute.xlu0 %144  ;;  %v280_v58 = vadd.f32 %v264_v48, %v180_v50 }
  0xc9   :  { %534 = vperm.xlu1 %810, %v74_v59   ;;  %v277_v30 = vadd.f32 %v261_v25, %v177_v24 }
  0xcb   :  { %v313_v2 = vpop.permute.xlu1 %312  ;;  %v430_v0 = vpop.permute.xlu0 %429 }
  0xcc   :  { %v361_v26 = vmul.f32 %v1070_v8, %v313_v2 }
  0xcd   :  { %539 = vperm.xlu1 %810, %v75_v61  }
  0xce   :  { %v377_v31 = vadd.f32 %v361_v26, %v277_v30 }
  0xcf   :  { %v317_v1 = vpop.permute.xlu1 %316 }
  0xd0   :  { %v362_v32 = vmul.f32 %v1070_v8, %v317_v1  ;;  %v473_v36 = vadd.f32 %v420_v35, %v377_v31 }
  0xd1   :  { %544 = vperm.xlu1 %810, %v76_v12  }
  0xd2   :  { %v378_v37 = vadd.f32 %v362_v32, %v278_v34  ;;  %v489_v40 = vmax.f32 %v473_v36, 0.0  ;;  %v268_v36 = vmul.f32 %v1062_v63, %v1054_v57 }
  0xd4   :  { %v415_v19 = vpop.permute.xlu1 %414 }
  0xd5   :  { %v472_v20 = vadd.f32 %v415_v19, %v376_v18  ;;  %676 = vperm.xlu1 %810, %v83_v11   ;;  %v155_v11 = vpop.permute.xlu0 %154  ;;  %v182_v18 = vmul.f32 %v1064_v3, %v145_v55 }
  0xd7   :  { %v488_v22 = vmax.f32 %v472_v20, 0.0 }
  0xd8   :  { %v130_v23 = vpop.permute.xlu1 %129 }
  0xd9   :  { %v501_v13 = vpack.c.bf16 %v488_v22, %v487_v21  ;;  %v179_v51 = vmul.f32 %v1064_v3, %v130_v23  ;;  %v282_v23 = vadd.f32 %v266_v17, %v182_v18 }
  0xdb   :  { %744 = vmatprep.subr.bf16.mxu0 %v501_v13  ;;  %766 = vmatprep.subr.bf16.mxu1 %v501_v13 }
  0xdc   :  { %745 = vmatpush3.bf16.msra.mxu0 %v501_v13  ;;  %774 = vmatpush3.bf16.msra.mxu1 %v501_v13  ;;  %v440_v13 = vpop.permute.xlu0 %439 }
  0xdd   :  { %v221_v43 = vpop.permute.xlu1 %220 }
  0xde   :  { %v263_v46 = vmul.f32 %v1062_v63, %v221_v43 }
  0xe0   :  { %v279_v56 = vadd.f32 %v263_v46, %v179_v51  ;;  %v165_v31 = vpop.permute.xlu0 %164 }
  0xe2   :  { %v321_v27 = vpop.permute.xlu1 %320 }
  0xe3   :  { %v363_v52 = vmul.f32 %v1070_v8, %v321_v27 }
  0xe5   :  { %v379_v59 = vadd.f32 %v363_v52, %v279_v56 }
  0xe6   :  { %v325_v33 = vpop.permute.xlu1 %324 }
  0xe7   :  { %v364_v60 = vmul.f32 %v1070_v8, %v325_v33  ;;  %v475_v5 = vadd.f32 %v430_v0, %v379_v59 }
  0xe9   :  { %v380_v6 = vadd.f32 %v364_v60, %v280_v58  ;;  %v491_v49 = vmax.f32 %v475_v5, 0.0 }
  0xeb   :  { %v425_v38 = vpop.permute.xlu1 %424 }
  0xec   :  { %v474_v39 = vadd.f32 %v425_v38, %v378_v37  ;;  %v270_v37 = vmul.f32 %v1062_v63, %v1060_v62  ;;  %v184_v38 = vmul.f32 %v1064_v3, %v155_v11 }
  0xee   :  { %v490_v41 = vmax.f32 %v474_v39, 0.0  ;;  %v186_v39 = vmul.f32 %v1064_v3, %v165_v31  ;;  %v284_v46 = vadd.f32 %v268_v36, %v184_v38 }
  0xef   :  { %v140_v42 = vpop.permute.xlu1 %139 }
  0xf0   :  { %v502_v44 = vpack.c.bf16 %v490_v41, %v489_v40  ;;  %v181_v1 = vmul.f32 %v1064_v3, %v140_v42  ;;  %v286_v48 = vadd.f32 %v270_v37, %v186_v39 }
  0xf2   :  { %746 = vmatprep.subr.bf16.mxu0 %v502_v44  ;;  %767 = vmatprep.subr.bf16.mxu1 %v502_v44 }
  0xf3   :  { %747 = vmatpush3.bf16.msra.mxu0 %v502_v44  ;;  %775 = vmatpush3.bf16.msra.mxu1 %v502_v44  ;;  %v450_v44 = vpop.permute.xlu0 %449 }
  0xf4   :  { %v229_v47 = vpop.permute.xlu1 %228 }
  0xf5   :  { %v265_v15 = vmul.f32 %v1062_v63, %v229_v47 }
  0xf7   :  { %v281_v19 = vadd.f32 %v265_v15, %v181_v1  ;;  %v465_v59 = vpop.permute.xlu0 %464 }
  0xf9   :  { %v329_v54 = vpop.permute.xlu1 %328 }
  0xfa   :  { %v365_v4 = vmul.f32 %v1070_v8, %v329_v54 }
  0xfc   :  { %v381_v20 = vadd.f32 %v365_v4, %v281_v19 }
  0xfd   :  { %v333_v61 = vpop.permute.xlu1 %332 }
  0xfe   :  { %v366_v21 = vmul.f32 %v1070_v8, %v333_v61  ;;  %v477_v43 = vadd.f32 %v440_v13, %v381_v20 }
 0x100   :  { %v382_v24 = vadd.f32 %v366_v21, %v282_v23  ;;  %v493_v27 = vmax.f32 %v477_v43, 0.0 }
 0x102   :  { %v435_v2 = vpop.permute.xlu1 %434 }
 0x103   :  { %v476_v9 = vadd.f32 %v435_v2, %v380_v6 }
 0x105   :  { %v492_v10 = vmax.f32 %v476_v9, 0.0 }
 0x106   :  { %v150_v12 = vpop.permute.xlu1 %149 }
 0x107   :  { %v503_v14 = vpack.c.bf16 %v492_v10, %v491_v49  ;;  %v183_v32 = vmul.f32 %v1064_v3, %v150_v12  ;;  %v814_v10 = vld [vmem:[%s1193_s3 + $0x18] sm:$0xff]   ;;  %v515_v12 = vpop.permute.xlu0 %514 }
 0x109   :  { %748 = vmatprep.subr.bf16.mxu0 %v503_v14  ;;  %768 = vmatprep.subr.bf16.mxu1 %v503_v14 }
 0x10a   :  { %749 = vmatpush3.bf16.msra.mxu0 %v503_v14  ;;  %776 = vmatpush3.bf16.msra.mxu1 %v503_v14 }
 0x10b   :  { %v237_v45 = vpop.permute.xlu1 %236 }
 0x10c   :  { %v267_v30 = vmul.f32 %v1062_v63, %v237_v45  ;;  %v525_v45 = vpop.permute.xlu0 %524 }
 0x10e   :  { %v283_v35 = vadd.f32 %v267_v30, %v183_v32 }
 0x110   :  { %v337_v16 = vpop.permute.xlu1 %336  ;;  %v652_v1 = vpop.permute.xlu0 %651 }
 0x111   :  { %v367_v33 = vmul.f32 %v1070_v8, %v337_v16 }
 0x113   :  { %v383_v40 = vadd.f32 %v367_v33, %v283_v35 }
 0x114   :  { %v341_v22 = vpop.permute.xlu1 %340  ;;  %v657_v16 = vpop.permute.xlu0 %656 }
 0x115   :  { %v368_v41 = vmul.f32 %v1070_v8, %v341_v22  ;;  %v479_v51 = vadd.f32 %v450_v44, %v383_v40 }
 0x117   :  { %v384_v54 = vadd.f32 %v368_v41, %v284_v46  ;;  %v495_v61 = vmax.f32 %v479_v51, 0.0 }
 0x118   :  { %v662_v17 = vpop.permute.xlu0 %661 }
 0x119   :  { %v445_v25 = vpop.permute.xlu1 %444 }
 0x11a   :  { %v478_v26 = vadd.f32 %v445_v25, %v382_v24 }
 0x11c   :  { %v494_v28 = vmax.f32 %v478_v26, 0.0  ;;  %v667_v32 = vpop.permute.xlu0 %666 }
 0x11d   :  { %v160_v29 = vpop.permute.xlu1 %159 }
 0x11e   :  { %v504_v7 = vpack.c.bf16 %v494_v28, %v493_v27  ;;  %v185_v57 = vmul.f32 %v1064_v3, %v160_v29 }
 0x120   :  { %750 = vmatprep.subr.bf16.mxu0 %v504_v7  ;;  %769 = vmatprep.subr.bf16.mxu1 %v504_v7 }
 0x121   :  { %751 = vmatpush3.bf16.msra.mxu0 %v504_v7  ;;  %777 = vmatpush3.bf16.msra.mxu1 %v504_v7 }
 0x122   :  { %v245_v53 = vpop.permute.xlu1 %244 }
 0x123   :  { %v269_v50 = vmul.f32 %v1062_v63, %v245_v53 }
 0x125   :  { %v285_v56 = vadd.f32 %v269_v50, %v185_v57 }
 0x127   :  { %v345_v34 = vpop.permute.xlu1 %344 }
 0x128   :  { %v369_v62 = vmul.f32 %v1070_v8, %v345_v34 }
 0x12a   :  { %v385_v5 = vadd.f32 %v369_v62, %v285_v56 }
 0x12b   :  { %v349_v42 = vpop.permute.xlu1 %348 }
 0x12c   :  { %v370_v47 = vmul.f32 %v1070_v8, %v349_v42  ;;  %v813_v8 = vld [vmem:[%s1193_s3 + $0x8] sm:$0xff]  }
 0x12e   :  { %v386_v52 = vadd.f32 %v370_v47, %v286_v48  ;;  %v672_v48 = vpop.permute.xlu0 %671 }
 0x130   :  { %v455_v55 = vpop.permute.xlu1 %454  ;;  %v482_v60 = vadd.f32 %v465_v59, %v386_v52 }
 0x131   :  { %v480_v58 = vadd.f32 %v455_v55, %v384_v54 }
 0x132   :  { %v498_v49 = vmax.f32 %v482_v60, 0.0  ;;  %v682_v59 = vpop.permute.xlu0 %681 }
 0x133   :  { %v496_v0 = vmax.f32 %v480_v58, 0.0 }
 0x134   :  { %v460_v6 = vpop.permute.xlu1 %459 }
 0x135   :  { %v505_v2 = vpack.c.bf16 %v496_v0, %v495_v61  ;;  %v481_v9 = vadd.f32 %v460_v6, %v385_v5 }
 0x137   :  { %v497_v63 = vmax.f32 %v481_v9, 0.0  ;;  %752 = vmatprep.subr.bf16.mxu0 %v505_v2  ;;  %770 = vmatprep.subr.bf16.mxu1 %v505_v2 }
 0x138   :  { %753 = vmatpush3.bf16.msra.mxu0 %v505_v2  ;;  %778 = vmatpush3.bf16.msra.mxu1 %v505_v2  ;;  %v510_v14 = vpop.permute.xlu1 %509 }
 0x139   :  { %v506_v3 = vpack.c.bf16 %v498_v49, %v497_v63  ;;  %v705_v63 = vstv %s1196_s6 }
 0x13b   :  { %754 = vmatprep.subr.bf16.mxu0 %v506_v3  ;;  %771 = vmatprep.subr.bf16.mxu1 %v506_v3 }
 0x13c   :  { %755 = vmatpush3.bf16.msra.mxu0 %v506_v3  ;;  %779 = vmatpush3.bf16.msra.mxu1 %v506_v3  ;;  %v520_v15 = vpop.permute.xlu1 %519 }
 0x13f   :  { %757 = vmatmul.mubr.bf16.vlgmr.msra.gmra.mrb[0].mxu0 %v813_v8  ;;  %761 = vmatmul.mubr.bf16.vlgmr.msra.gmra.mrb[0].mxu1 %v814_v10 }
 0x140   :  { %v647_v4 = vpop.permute.xlu1 %646 }
 0x144   :  { %v530_v11 = vpop.permute.xlu1 %529 }
 0x148   :  { %v535_v18 = vpop.permute.xlu1 %534 }
 0x14c   :  { %v540_v7 = vpop.permute.xlu1 %539 }
 0x150   :  { %v545_v41 = vpop.permute.xlu1 %544 }
 0x154   :  { %v677_v55 = vpop.permute.xlu1 %676 }
 0x212   :  { %v758_v19 = vpop.f32.mrb[0].mxu0  ;;  %v762_v20 = vpop.f32.mrb[0].mxu1 }
 0x213   :  { %v605_v21 = vpop.f32.mrb[1].mxu0  ;;  %v621_v22 = vpop.f32.mrb[1].mxu1  ;;  %v614_v23 = vadd.f32 %v758_v19, %v520_v15  ;;  %v630_v38 = vadd.f32 %v762_v20, %v540_v7 }
 0x214   :  { %v606_v13 = vadd.f32 %v605_v21, %v510_v14  ;;  %v759_v43 = vpop.f32.mrb[2].mxu0  ;;  %v763_v24 = vpop.f32.mrb[2].mxu1  ;;  %v622_v30 = vadd.f32 %v621_v22, %v530_v11 }
 0x215   :  { %v608_v25 = vpop.f32.mrb[3].mxu0  ;;  %v624_v26 = vpop.f32.mrb[3].mxu1  ;;  %v617_v28 = vadd.f32 %v759_v43, %v525_v45  ;;  %v638_v53 = vmax.f32 %v614_v23, 0.0  ;;  %v633_v44 = vadd.f32 %v763_v24, %v545_v41  ;;  %v642_v50 = vmax.f32 %v630_v38, 0.0 }
 0x216   :  { %v636_v27 = vmax.f32 %v606_v13, 0.0  ;;  %v609_v29 = vadd.f32 %v608_v25, %v515_v12  ;;  %v625_v36 = vadd.f32 %v624_v26, %v535_v18  ;;  %v640_v39 = vmax.f32 %v622_v30, 0.0 }
 0x217   :  { %v639_v34 = vmax.f32 %v617_v28, 0.0  ;;  %v686_v37 = vmul.f32 %v657_v16, %v638_v53  ;;  %v643_v62 = vmax.f32 %v633_v44, 0.0  ;;  %v690_v56 = vmul.f32 %v677_v55, %v642_v50 }
 0x218   :  { %v637_v31 = vmax.f32 %v609_v29, 0.0  ;;  %v684_v33 = vmul.f32 %v647_v4, %v636_v27  ;;  %v641_v46 = vmax.f32 %v625_v36, 0.0  ;;  %v688_v51 = vmul.f32 %v667_v32, %v640_v39 }
 0x219   :  { %v687_v42 = vmul.f32 %v662_v17, %v639_v34  ;;  %v691_v60 = vmul.f32 %v682_v59, %v643_v62 }
 0x21a   :  { %v685_v35 = vmul.f32 %v652_v1, %v637_v31  ;;  %v689_v52 = vmul.f32 %v672_v48, %v641_v46 }
 0x21c   :  { %v692_v40 = vadd.f32 %v685_v35, %v684_v33 }
 0x21e   :  { %v693_v47 = vadd.f32 %v692_v40, %v686_v37 }
 0x220   :  { %v694_v57 = vadd.f32 %v693_v47, %v687_v42 }
 0x222   :  { %v695_v54 = vadd.f32 %v694_v57, %v688_v51 }
 0x224   :  { %v696_v58 = vadd.f32 %v695_v54, %v689_v52 }
 0x226   :  { %v697_v61 = vadd.f32 %v696_v58, %v690_v56 }
 0x228   :  { %v698_v0 = vadd.f32 %v697_v61, %v691_v60 }
 0x22a   :  { %v699_v5 = vrot.slane %v698_v0, 4 }
 0x22c   :  { %v700_v6 = vadd.f32 %v699_v5, %v698_v0 }
 0x22e   :  { %v701_v2 = vrot.slane %v700_v6, 2 }
 0x230   :  { %v702_v9 = vadd.f32 %v701_v2, %v700_v6 }
 0x232   :  { %v703_v49 = vrot.slane %v702_v9, 1 }
 0x234   :  { %v704_v3 = vadd.f32 %v703_v49, %v702_v9 }
 0x236   :  { %v706_v8 = vadd.f32 %v705_v63, %v704_v3 }
 0x238   :  { %815 = vtanh.f32 %v706_v8 }
 0x242   :  { %v816_v10 = vpop.eup %815 }
 0x243   :  { %v708_v12 = vmul.f32 2.0, %v816_v10 }
 0x245   :  { %709 = vst [vmem:[#allocation3] sm:$0x1] %v708_v12 }
 0x246   :  { %828 = shalt.err (!%p825_p4)
}
 0x247   :  { %s829_s6 = scalar_lea.hbm %s1197_s7, 16 }
 0x248   :  { %p830_p5 = scmp.ne.s32.totalorder %s1197_s7, %s829_s6  ;;  %p833_p6 = scmp.lt.u32.totalorder %s829_s6, %s1197_s7 }
 0x24a   :  { %p835_p7 = pnand %p833_p6, %p830_p5 }
 0x24c   :  { %838 = shalt.err (!%p835_p7)
}
 0x24d   :  { %719 = dma.vmem_to_hbm [thread:$0]  %s717_s10, 16, %s1197_s7, [#allocation4]  }
 0x24e   :  { %839 = dma.done.wait [#allocation4], 16  }
 0x24f   :  { %840 = vsyncadd [#allocation4], 4294967280 }
 0x250   :  { %723 = vsyncpa [#allocation4], 1 }

</bundles_post_ra>
